<compile_context>
chip_gen: v6e
topology: v6e:2x2x1
jax: 0.10.0
libtpu: 0.0.40
codegen_flags: <defaults>
</compile_context>

<pallas_src>
import functools

import jax
import jax.numpy as jnp
from jax.experimental import pallas as pl
from jax.experimental.pallas import tpu as pltpu

LEAKY_SLOPE = 0.01   # nn.LeakyReLU() default
BN_EPS = 1e-5        # nn.BatchNorm1d default

# Column layout of the packed per-feature parameter tile, shape (hidden, 8):
_G1, _BT1, _G2, _BT2, _B1, _B2 = 0, 1, 2, 3, 4, 5


def base_network_kernel(x_ref, w1_ref, w2_ref, p_ref, o_ref, *, use_bn):
    """Whole forward pass; activations live as (features, batch): batch on lanes."""
    mxu_dtype = w1_ref.dtype
    x = x_ref[...].astype(mxu_dtype)                           # (B, D_in)

    def layer(h_mxu, w_ref, g_col, bt_col, b_col, *, rhs_contract_axis):
        # Linear on the MXU: W (H, D) contracted with h's feature axis -> (H, B),
        # f32 accumulate.  No transposes needed on either operand.
        y = jax.lax.dot_general(
            w_ref[...], h_mxu,
            dimension_numbers=(((1,), (rhs_contract_axis,)), ((), ())),
            preferred_element_type=jnp.float32)
        if use_bn:
            # Training-style BatchNorm1d over the batch (lane) axis, f32 math.
            # Linear bias omitted here: it cancels under mean subtraction.
            inv_b = jnp.float32(1.0 / y.shape[1])
            mean = jnp.sum(y, axis=1, keepdims=True) * inv_b
            var = jnp.sum(y * y, axis=1, keepdims=True) * inv_b - mean * mean
            y = (y - mean) * jax.lax.rsqrt(var + BN_EPS)
            y = y * p_ref[:, g_col:g_col + 1] + p_ref[:, bt_col:bt_col + 1]
        else:
            # batch == 1: PyTorch skips BN, so the Linear bias must be applied.
            y = y + p_ref[:, b_col:b_col + 1]
        # LeakyReLU (slope < 1 -> max(y, slope*y) is exact).
        y = jnp.maximum(y, LEAKY_SLOPE * y)
        # Dropout: identity (inference behaviour).
        return y

    # Layer 1 consumes x in (B, D_in) layout -> contract x's last axis.
    h = layer(x, w1_ref, _G1, _BT1, _B1, rhs_contract_axis=1)          # (H1, B) f32
    # Layer 2 consumes h in (H1, B) layout -> contract h's first axis.
    h = layer(h.astype(mxu_dtype), w2_ref, _G2, _BT2, _B2,
              rhs_contract_axis=0)                                      # (H2, B) f32
    # In-kernel transpose (XLU) so the caller gets (B, H) with no extra XLA
    # transpose kernel / HBM roundtrip on the output.
    o_ref[...] = h.T.astype(o_ref.dtype)


def _pack_affine(hidden, g1, bt1, g2, bt2, b1, b2):
    """Pack all per-feature vectors into one (hidden, 8) f32 tile (cols 6/7 pad)."""
    zeros = jnp.zeros((hidden,), jnp.float32)
    cols = [g1, bt1, g2, bt2, b1, b2, zeros, zeros]
    return jnp.stack([jnp.asarray(c, jnp.float32).reshape(hidden) for c in cols], axis=1)


def prepare_params(params, mxu_dtype=jnp.bfloat16):
    """One-time parameter prep (outside the per-call path):
       - pack gamma/beta/bias for both layers into a single (hidden, 8) tile,
       - cast weights to the MXU dtype (bf16: native MXU rate on v6e/v7x,
         halved weight DMA bytes).  BN / LeakyReLU math stays f32 in-kernel."""
    (w1, b1, g1, bt1, w2, b2, g2, bt2) = params
    hidden = w2.shape[0]
    return {
        "w1": jnp.asarray(w1, mxu_dtype),
        "w2": jnp.asarray(w2, mxu_dtype),
        "packed": _pack_affine(hidden, g1, bt1, g2, bt2, b1, b2),
    }


def base_network_forward(x, prep):
    """x: (B, D_in) f32.  prep: output of prepare_params().  Returns (B, H) f32."""
    B = x.shape[0]
    H = prep["w2"].shape[0]
    kernel = functools.partial(base_network_kernel, use_bn=(B > 1))
    vmem = pl.BlockSpec(memory_space=pltpu.MemorySpace.VMEM)
    # Grid-less whole-array kernel: the full problem fits in VMEM on every
    # generation, so no grid / vmem_limit override is needed at these sizes.
    # TODO(synk): batch-tiled grid + two-pass BN for very large batches (see top).
    return pl.pallas_call(
        kernel,
        out_shape=jax.ShapeDtypeStruct((B, H), jnp.float32),
        in_specs=[vmem, vmem, vmem, vmem],
        out_specs=vmem,
    )(x, prep["w1"], prep["w2"], prep["packed"])


def init_params(key, input_dims, hidden=32):
    """Kaiming-normal-style init (fan_in) for the two Linear layers, PyTorch layout."""
    k1, k2, k3, k4 = jax.random.split(key, 4)
    # Linear 1: (input_dims -> hidden), weight stored as (out, in) like PyTorch.
    w1 = jax.random.normal(k1, (hidden, input_dims), jnp.float32) * jnp.sqrt(2.0 / input_dims)
    b1 = (jax.random.uniform(k2, (hidden,), jnp.float32) - 0.5) * 2.0 / jnp.sqrt(input_dims)
    # Linear 2: (hidden -> hidden)
    w2 = jax.random.normal(k3, (hidden, hidden), jnp.float32) * jnp.sqrt(2.0 / hidden)
    b2 = (jax.random.uniform(k4, (hidden,), jnp.float32) - 0.5) * 2.0 / jnp.sqrt(hidden)
    # BatchNorm affine params (PyTorch default init: gamma=1, beta=0)
    g1 = jnp.ones((hidden,), jnp.float32)
    bt1 = jnp.zeros((hidden,), jnp.float32)
    g2 = jnp.ones((hidden,), jnp.float32)
    bt2 = jnp.zeros((hidden,), jnp.float32)
    return (w1, b1, g1, bt1, w2, b2, g2, bt2)


def reference_forward(x, params):
    """Pure-JAX f32 reference mirroring the PyTorch module (incl. batch>1 branch)."""
    (w1, b1, g1, bt1, w2, b2, g2, bt2) = params
    B = x.shape[0]

    def layer(h, w, b, g, bt):
        y = h @ w.T + b
        if B > 1:
            mean = jnp.mean(y, axis=0, keepdims=True)
            var = jnp.mean((y - mean) ** 2, axis=0, keepdims=True)
            y = (y - mean) / jnp.sqrt(var + BN_EPS) * g + bt
        return jnp.where(y > 0, y, LEAKY_SLOPE * y)

    h = layer(x, w1, b1, g1, bt1)
    return layer(h, w2, b2, g2, bt2)


if __name__ == "__main__":
    key = jax.random.PRNGKey(0)
    k_x, k_p = jax.random.split(key)

    batch, input_dims, hidden = 128, 16, 32
    x = jax.random.normal(k_x, (batch, input_dims), jnp.float32)
    params = init_params(k_p, input_dims, hidden)

    # --- f32-MXU path: validates kernel logic at tight tolerance ---
    prep_f32 = prepare_params(params, mxu_dtype=jnp.float32)
    out = jax.block_until_ready(base_network_forward(x, prep_f32))
    ref = reference_forward(x, params)
    assert out.shape == (batch, hidden)
    assert jnp.allclose(out, ref, atol=5e-4, rtol=5e-4), "mismatch vs reference (f32, batch>1)"

    # --- bf16-MXU path (default; per perf review): f32 BN/LeakyReLU, looser tol ---
    prep_bf16 = prepare_params(params)  # mxu_dtype=bf16
    out_bf = jax.block_until_ready(base_network_forward(x, prep_bf16))
    assert out_bf.shape == (batch, hidden)
    assert jnp.allclose(out_bf, ref, atol=5e-2, rtol=5e-2), "mismatch vs reference (bf16, batch>1)"

    # --- batch == 1 path (PyTorch skips BatchNorm; Linear bias applied instead) ---
    x1 = x[:1]
    out1 = jax.block_until_ready(base_network_forward(x1, prep_f32))
    ref1 = reference_forward(x1, params)
    assert out1.shape == (1, hidden)
    assert jnp.allclose(out1, ref1, atol=5e-4, rtol=5e-4), "mismatch vs reference (batch==1)"

    print("KERNEL_OK")
</pallas_src>

<mosaic_0001>
module attributes {stable_mosaic.version = 11 : i64} {
  func.func @base_network_kernel(%arg0: memref<128x16xf32, #tpu.memory_space<vmem>>, %arg1: memref<32x16xf32, #tpu.memory_space<vmem>>, %arg2: memref<32x32xf32, #tpu.memory_space<vmem>>, %arg3: memref<32x8xf32, #tpu.memory_space<vmem>>, %arg4: memref<128x32xf32, #tpu.memory_space<vmem>>) attributes {dimension_semantics = [], scalar_prefetch = 0 : i64, scratch_operands = 0 : i64, tpu.core_type = #tpu.core_type<tc>} {
    %c0 = arith.constant 0 : index
    %c0_0 = arith.constant 0 : index
    %0 = vector.load %arg0[%c0, %c0_0] : memref<128x16xf32, #tpu.memory_space<vmem>>, vector<128x16xf32>
    %c0_1 = arith.constant 0 : index
    %c0_2 = arith.constant 0 : index
    %1 = vector.load %arg1[%c0_1, %c0_2] : memref<32x16xf32, #tpu.memory_space<vmem>>, vector<32x16xf32>
    %cst = arith.constant dense<0.000000e+00> : vector<32x128xf32>
    %2 = tpu.matmul %1, %0, %cst {dimension_numbers = #tpu.dot_dimension_numbers<[1], [1], [0], [0], [0, 0, 1, 0], [], []>} : vector<32x16xf32>, vector<128x16xf32>, vector<32x128xf32> -> vector<32x128xf32>
    %cst_3 = arith.constant dense<0.000000e+00> : vector<32xf32>
    %3 = vector.multi_reduction <add>, %2, %cst_3 [1] : vector<32x128xf32> to vector<32xf32>
    %4 = vector.shape_cast %3 : vector<32xf32> to vector<32x1xf32>
    %cst_4 = arith.constant 7.812500e-03 : f32
    %5 = vector.broadcast %cst_4 : f32 to vector<32x1xf32>
    %6 = arith.mulf %4, %5 : vector<32x1xf32>
    %7 = arith.mulf %2, %2 : vector<32x128xf32>
    %cst_5 = arith.constant dense<0.000000e+00> : vector<32xf32>
    %8 = vector.multi_reduction <add>, %7, %cst_5 [1] : vector<32x128xf32> to vector<32xf32>
    %9 = vector.shape_cast %8 : vector<32xf32> to vector<32x1xf32>
    %cst_6 = arith.constant 7.812500e-03 : f32
    %10 = vector.broadcast %cst_6 : f32 to vector<32x1xf32>
    %11 = arith.mulf %9, %10 : vector<32x1xf32>
    %12 = arith.mulf %6, %6 : vector<32x1xf32>
    %13 = arith.subf %11, %12 : vector<32x1xf32>
    %14 = vector.broadcast %6 : vector<32x1xf32> to vector<32x128xf32>
    %15 = arith.subf %2, %14 : vector<32x128xf32>
    %cst_7 = arith.constant 9.99999974E-6 : f32
    %16 = vector.broadcast %cst_7 : f32 to vector<32x1xf32>
    %17 = arith.addf %13, %16 : vector<32x1xf32>
    %18 = math.rsqrt %17 : vector<32x1xf32>
    %19 = vector.broadcast %18 : vector<32x1xf32> to vector<32x128xf32>
    %20 = arith.mulf %15, %19 : vector<32x128xf32>
    %c0_8 = arith.constant 0 : index
    %c0_9 = arith.constant 0 : index
    %21 = vector.load %arg3[%c0_8, %c0_9] : memref<32x8xf32, #tpu.memory_space<vmem>>, vector<32x1xf32>
    %22 = vector.broadcast %21 : vector<32x1xf32> to vector<32x128xf32>
    %23 = arith.mulf %20, %22 : vector<32x128xf32>
    %c0_10 = arith.constant 0 : index
    %c1 = arith.constant 1 : index
    %24 = vector.load %arg3[%c0_10, %c1] : memref<32x8xf32, #tpu.memory_space<vmem>>, vector<32x1xf32>
    %25 = vector.broadcast %24 : vector<32x1xf32> to vector<32x128xf32>
    %26 = arith.addf %23, %25 : vector<32x128xf32>
    %cst_11 = arith.constant 0.00999999977 : f32
    %27 = vector.broadcast %cst_11 : f32 to vector<32x128xf32>
    %28 = arith.mulf %27, %26 : vector<32x128xf32>
    %29 = arith.maximumf %26, %28 : vector<32x128xf32>
    %c0_12 = arith.constant 0 : index
    %c0_13 = arith.constant 0 : index
    %30 = vector.load %arg2[%c0_12, %c0_13] : memref<32x32xf32, #tpu.memory_space<vmem>>, vector<32x32xf32>
    %cst_14 = arith.constant dense<0.000000e+00> : vector<32x128xf32>
    %31 = tpu.matmul %30, %29, %cst_14 {dimension_numbers = #tpu.dot_dimension_numbers<[1], [0], [0], [1], [0, 0, 1, 1], [], []>} : vector<32x32xf32>, vector<32x128xf32>, vector<32x128xf32> -> vector<32x128xf32>
    %cst_15 = arith.constant dense<0.000000e+00> : vector<32xf32>
    %32 = vector.multi_reduction <add>, %31, %cst_15 [1] : vector<32x128xf32> to vector<32xf32>
    %33 = vector.shape_cast %32 : vector<32xf32> to vector<32x1xf32>
    %cst_16 = arith.constant 7.812500e-03 : f32
    %34 = vector.broadcast %cst_16 : f32 to vector<32x1xf32>
    %35 = arith.mulf %33, %34 : vector<32x1xf32>
    %36 = arith.mulf %31, %31 : vector<32x128xf32>
    %cst_17 = arith.constant dense<0.000000e+00> : vector<32xf32>
    %37 = vector.multi_reduction <add>, %36, %cst_17 [1] : vector<32x128xf32> to vector<32xf32>
    %38 = vector.shape_cast %37 : vector<32xf32> to vector<32x1xf32>
    %cst_18 = arith.constant 7.812500e-03 : f32
    %39 = vector.broadcast %cst_18 : f32 to vector<32x1xf32>
    %40 = arith.mulf %38, %39 : vector<32x1xf32>
    %41 = arith.mulf %35, %35 : vector<32x1xf32>
    %42 = arith.subf %40, %41 : vector<32x1xf32>
    %43 = vector.broadcast %35 : vector<32x1xf32> to vector<32x128xf32>
    %44 = arith.subf %31, %43 : vector<32x128xf32>
    %cst_19 = arith.constant 9.99999974E-6 : f32
    %45 = vector.broadcast %cst_19 : f32 to vector<32x1xf32>
    %46 = arith.addf %42, %45 : vector<32x1xf32>
    %47 = math.rsqrt %46 : vector<32x1xf32>
    %48 = vector.broadcast %47 : vector<32x1xf32> to vector<32x128xf32>
    %49 = arith.mulf %44, %48 : vector<32x128xf32>
    %c0_20 = arith.constant 0 : index
    %c2 = arith.constant 2 : index
    %50 = vector.load %arg3[%c0_20, %c2] : memref<32x8xf32, #tpu.memory_space<vmem>>, vector<32x1xf32>
    %51 = vector.broadcast %50 : vector<32x1xf32> to vector<32x128xf32>
    %52 = arith.mulf %49, %51 : vector<32x128xf32>
    %c0_21 = arith.constant 0 : index
    %c3 = arith.constant 3 : index
    %53 = vector.load %arg3[%c0_21, %c3] : memref<32x8xf32, #tpu.memory_space<vmem>>, vector<32x1xf32>
    %54 = vector.broadcast %53 : vector<32x1xf32> to vector<32x128xf32>
    %55 = arith.addf %52, %54 : vector<32x128xf32>
    %cst_22 = arith.constant 0.00999999977 : f32
    %56 = vector.broadcast %cst_22 : f32 to vector<32x128xf32>
    %57 = arith.mulf %56, %55 : vector<32x128xf32>
    %58 = arith.maximumf %55, %57 : vector<32x128xf32>
    %59 = tpu.transpose %58, [1, 0] : vector<32x128xf32> -> vector<128x32xf32>
    %c0_23 = arith.constant 0 : index
    %c0_24 = arith.constant 0 : index
    %60 = vector.load %arg4[%c0_23, %c0_24] : memref<128x32xf32, #tpu.memory_space<vmem>>, vector<128x32xf32>
    tpu.vector_store %arg4[%c0_23, %c0_24], %59 {strides = array<i32>} : memref<128x32xf32, #tpu.memory_space<vmem>>, vector<128x32xf32>,
    return
  }
}

</mosaic_0001>

<bundles_post_ra>
// kernel: tpu_custom_call.1
= control target key start
LH: loop header
LB: loop body
LE: loop exit
PB: predicated region body
PF: predicated region fallthrough
CT: control target
= control target key end

     0   :  { %vm37_vm0 = vcmask 130048   ;;  %v685_v20 = vmov 0   ;;  %v686_v31 = vmov 1   ;;  %vm295_vm1 = vcmask 261120   ;;  %s974_s0 = inlined_call_operand.vmem [shape: f32[128,16], index: 0, kind: input, shape index: {}]   ;;  %s975_s1 = inlined_call_operand.vmem [shape: f32[32,16], index: 1, kind: input, shape index: {}]   ;;  %s976_s3 = inlined_call_operand.vmem [shape: f32[32,8], index: 3, kind: input, shape index: {}]   ;;  %s977_s2 = inlined_call_operand.vmem [shape: f32[32,32], index: 2, kind: input, shape index: {}]   ;;  %s978_s4 = inlined_call_operand.vmem [shape: f32[128,32], index: 4, kind: output, shape index: {}]  }
   0x1   :  { %v32_v0 = vld [vmem:[%s974_s0 + $0x78] sm:$0xff]  ;;  %v31_v1 = vld [vmem:[%s974_s0 + $0x70] sm:$0xff]  ;;  %v30_v2 = vld [vmem:[%s974_s0 + $0x68] sm:$0xff]  ;;  %655 = vset.pattern.permute.xlu1 %v685_v20  ;;  %654 = vset.pattern.permute.xlu0 %v685_v20 }
   0x2   :  { %597 = vmatprep.subr.msk.mxu0 %vm37_vm0, %v32_v0  ;;  %v33_v3 = vld [vmem:[%s975_s1] sm:$0xff]  ;;  %v28_v5 = vld [vmem:[%s974_s0 + $0x58] sm:$0xff]  ;;  %v27_v6 = vld [vmem:[%s974_s0 + $0x50] sm:$0xff] }
   0x3   :  { %598 = vmatpush3.xpose.msk.msra.mxu0 %vm37_vm0, %v32_v0  ;;  %629 = vmatprep.mubr.msk.f32.mxu0 %vm37_vm0, %v33_v3  ;;  %v29_v4 = vld [vmem:[%s974_s0 + $0x60] sm:$0xff]  ;;  %v26_v7 = vld [vmem:[%s974_s0 + $0x48] sm:$0xff]  ;;  %v24_v9 = vld [vmem:[%s974_s0 + $0x38] sm:$0xff] }
   0x4   :  { %599 = vmatprep.subr.msk.mxu0 %vm37_vm0, %v31_v1  ;;  %v25_v8 = vld [vmem:[%s974_s0 + $0x40] sm:$0xff]  ;;  %v23_v10 = vld [vmem:[%s974_s0 + $0x30] sm:$0xff]  ;;  %v22_v11 = vld [vmem:[%s974_s0 + $0x28] sm:$0xff] }
   0x5   :  { %v21_v12 = vld [vmem:[%s974_s0 + $0x20] sm:$0xff]  ;;  %v20_v13 = vld [vmem:[%s974_s0 + $0x18] sm:$0xff]  ;;  %v19_v14 = vld [vmem:[%s974_s0 + $0x10] sm:$0xff] }
   0x6   :  { %v18_v15 = vld [vmem:[%s974_s0 + $0x8] sm:$0xff]  ;;  %v17_v16 = vld [vmem:[%s974_s0] sm:$0xff]  ;;  %v35_v18 = vld [vmem:[%s975_s1 + $0x10] sm:$0xff] }
   0x7   :  { %600 = vmatpush3.xpose.msk.msra.mxu0 %vm37_vm0, %v31_v1  ;;  %v34_v17 = vld [vmem:[%s975_s1 + $0x8] sm:$0xff]  ;;  %v36_v19 = vld [vmem:[%s975_s1 + $0x18] sm:$0xff]  ;;  %v833_v29 = vld [vmem:[%s976_s3 + $0x10] sm:$0xff] }
   0x8   :  { %601 = vmatprep.subr.msk.mxu0 %vm37_vm0, %v30_v2  ;;  %v839_v30 = vld [vmem:[%s976_s3 + $0x18] sm:$0xff]  ;;  %v845_v32 = vld [vmem:[%s976_s3 + $0x8] sm:$0xff]  ;;  %v853_v33 = vld [vmem:[%s976_s3] sm:$0xff] }
   0x9   :  { %v291_v34 = vld [vmem:[%s977_s2] sm:$0xff] }
   0xa   :  { %643 = vmatprep.mubr.msk.f32.mxu1 %vm295_vm1, %v291_v34 }
   0xb   :  { %602 = vmatpush3.xpose.msk.msra.mxu0 %vm37_vm0, %v30_v2 }
   0xc   :  { %603 = vmatprep.subr.msk.mxu0 %vm37_vm0, %v29_v4 }
   0xf   :  { %604 = vmatpush3.xpose.msk.msra.mxu0 %vm37_vm0, %v29_v4 }
  0x10   :  { %605 = vmatprep.subr.msk.mxu0 %vm37_vm0, %v28_v5 }
  0x13   :  { %606 = vmatpush3.xpose.msk.msra.mxu0 %vm37_vm0, %v28_v5 }
  0x14   :  { %607 = vmatprep.subr.msk.mxu0 %vm37_vm0, %v27_v6 }
  0x17   :  { %608 = vmatpush3.xpose.msk.msra.mxu0 %vm37_vm0, %v27_v6 }
  0x18   :  { %609 = vmatprep.subr.msk.mxu0 %vm37_vm0, %v26_v7 }
  0x1b   :  { %610 = vmatpush3.xpose.msk.msra.mxu0 %vm37_vm0, %v26_v7 }
  0x1c   :  { %611 = vmatprep.subr.msk.mxu0 %vm37_vm0, %v25_v8 }
  0x1f   :  { %612 = vmatpush3.xpose.msk.msra.mxu0 %vm37_vm0, %v25_v8 }
  0x20   :  { %613 = vmatprep.subr.msk.mxu0 %vm37_vm0, %v24_v9 }
  0x23   :  { %614 = vmatpush3.xpose.msk.msra.mxu0 %vm37_vm0, %v24_v9 }
  0x24   :  { %615 = vmatprep.subr.msk.mxu0 %vm37_vm0, %v23_v10 }
  0x27   :  { %616 = vmatpush3.xpose.msk.msra.mxu0 %vm37_vm0, %v23_v10 }
  0x28   :  { %617 = vmatprep.subr.msk.mxu0 %vm37_vm0, %v22_v11 }
  0x2b   :  { %618 = vmatpush3.xpose.msk.msra.mxu0 %vm37_vm0, %v22_v11 }
  0x2c   :  { %619 = vmatprep.subr.msk.mxu0 %vm37_vm0, %v21_v12 }
  0x2f   :  { %620 = vmatpush3.xpose.msk.msra.mxu0 %vm37_vm0, %v21_v12 }
  0x30   :  { %621 = vmatprep.subr.msk.mxu0 %vm37_vm0, %v20_v13 }
  0x33   :  { %622 = vmatpush3.xpose.msk.msra.mxu0 %vm37_vm0, %v20_v13 }
  0x34   :  { %623 = vmatprep.subr.msk.mxu0 %vm37_vm0, %v19_v14 }
  0x37   :  { %624 = vmatpush3.xpose.msk.msra.mxu0 %vm37_vm0, %v19_v14 }
  0x38   :  { %625 = vmatprep.subr.msk.mxu0 %vm37_vm0, %v18_v15 }
  0x3b   :  { %626 = vmatpush3.xpose.msk.msra.mxu0 %vm37_vm0, %v18_v15 }
  0x3c   :  { %627 = vmatprep.subr.msk.mxu0 %vm37_vm0, %v17_v16 }
  0x3f   :  { %628 = vmatpush3.xpose.msk.msra.mxu0 %vm37_vm0, %v17_v16 }
  0x42   :  { %630 = vmatmul.mubr.msk.f32.vlgmr.msra.gmra.mxu0 %vm37_vm0, %v34_v17 }
  0x43   :  { %632 = vmatprep.mubr.msk.f32.mxu0 %vm37_vm0, %v35_v18 }
  0x46   :  { %633 = vmatmul.mubr.msk.f32.gmra.mxu0 %vm37_vm0, %v36_v19 }
 0x102   :  { %v810_v21 = vpop.f32.mrf.mxu0 }
 0x103   :  { %185 = vadd.xlane.f32.xlu1 %v810_v21  ;;  %v196_v22 = vmul.f32 %v810_v21, %v810_v21 }
 0x104   :  { %v815_v23 = vpop.f32.mrf.mxu0 }
 0x105   :  { %201 = vadd.xlane.f32.xlu0 %v196_v22  ;;  %v195_v25 = vmul.f32 %v815_v23, %v815_v23 }
 0x106   :  { %v817_v24 = vpop.f32.mrf.mxu0 }
 0x107   :  { %183 = vadd.xlane.f32.xlu1 %v815_v23  ;;  %v198_v27 = vmul.f32 %v817_v24, %v817_v24 }
 0x108   :  { %v823_v26 = vpop.f32.mrf.mxu0 }
 0x109   :  { %189 = vadd.xlane.f32.xlu0 %v817_v24  ;;  %v197_v28 = vmul.f32 %v823_v26, %v823_v26 }
 0x10b   :  { %199 = vadd.xlane.f32.xlu1 %v195_v25 }
 0x10d   :  { %187 = vadd.xlane.f32.xlu0 %v823_v26 }
 0x10f   :  { %205 = vadd.xlane.f32.xlu1 %v198_v27 }
 0x111   :  { %203 = vadd.xlane.f32.xlu0 %v197_v28 }
 0x120   :  { %251 = vperm.xlu1 %655, %v833_v29  }
 0x124   :  { %656 = vset.pattern.permute.xlu1 %v686_v31 }
 0x125   :  { %276 = vperm.xlu1 %656, %v839_v30  }
 0x127   :  { %256 = vperm.xlu0 %654, %v839_v30  }
 0x129   :  { %657 = vset.pattern.permute.xlu1 %v685_v20 }
 0x12a   :  { %246 = vperm.xlu1 %657, %v845_v32  }
 0x12e   :  { %658 = vset.pattern.permute.xlu1 %v686_v31 }
 0x12f   :  { %272 = vperm.xlu1 %658, %v833_v29  }
 0x133   :  { %659 = vset.pattern.permute.xlu1 %v685_v20 }
 0x134   :  { %241 = vperm.xlu1 %659, %v853_v33  }
 0x138   :  { %660 = vset.pattern.permute.xlu1 %v686_v31 }
 0x139   :  { %268 = vperm.xlu1 %660, %v845_v32  }
 0x13d   :  { %264 = vperm.xlu1 %660, %v853_v33  }
 0x18c   :  { %v186_v35 = vpop.xlane.xlu1 %185 }
 0x18d   :  { %v192_v36 = vmul.f32 0.0078125, %v186_v35 }
 0x18e   :  { %v202_v37 = vpop.xlane.xlu0 %201 }
 0x18f   :  { %v212_v39 = vmul.f32 %v192_v36, %v192_v36  ;;  %v208_v40 = vmul.f32 0.0078125, %v202_v37  ;;  %v220_v7 = vsub.f32 %v810_v21, %v192_v36 }
 0x190   :  { %v184_v38 = vpop.xlane.xlu1 %183 }
 0x191   :  { %v216_v43 = vsub.f32 %v208_v40, %v212_v39  ;;  %v191_v45 = vmul.f32 0.0078125, %v184_v38  ;;  %v292_v39 = vld [vmem:[%s977_s2 + $0x8] sm:$0xff]  ;;  %v293_v40 = vld [vmem:[%s977_s2 + $0x10] sm:$0xff] }
 0x192   :  { %v190_v41 = vpop.xlane.xlu0 %189 }
 0x193   :  { %v194_v46 = vmul.f32 0.0078125, %v190_v41  ;;  %v224_v52 = vadd.f32 1e-05, %v216_v43  ;;  %v211_v54 = vmul.f32 %v191_v45, %v191_v45  ;;  %v219_v18 = vsub.f32 %v815_v23, %v191_v45  ;;  %v294_v41 = vld [vmem:[%s977_s2 + $0x18] sm:$0xff] }
 0x194   :  { %v200_v42 = vpop.xlane.xlu1 %199 }
 0x195   :  { %v214_v49 = vmul.f32 %v194_v46, %v194_v46  ;;  %v207_v50 = vmul.f32 0.0078125, %v200_v42  ;;  %669 = vrsqrt.f32 %v224_v52  ;;  %v222_v4 = vsub.f32 %v817_v24, %v194_v46 }
 0x196   :  { %v188_v44 = vpop.xlane.xlu0 %187  ;;  %v687_v42 = vmov 2  }
 0x197   :  { %v193_v47 = vmul.f32 0.0078125, %v188_v44  ;;  %v215_v59 = vsub.f32 %v207_v50, %v211_v54  ;;  %662 = vset.pattern.permute.xlu1 %v687_v42  ;;  %661 = vset.pattern.permute.xlu0 %v687_v42 }
 0x198   :  { %v206_v48 = vpop.xlane.xlu1 %205 }
 0x199   :  { %v210_v51 = vmul.f32 0.0078125, %v206_v48  ;;  %v213_v55 = vmul.f32 %v193_v47, %v193_v47  ;;  %v223_v0 = vadd.f32 1e-05, %v215_v59  ;;  %v221_v8 = vsub.f32 %v823_v26, %v193_v47 }
 0x19a   :  { %v204_v53 = vpop.xlane.xlu0 %203 }
 0x19b   :  { %v218_v56 = vsub.f32 %v210_v51, %v214_v49  ;;  %v209_v57 = vmul.f32 0.0078125, %v204_v53  ;;  %v688_v51 = vmov 3  }
 0x19c   :  { %v252_v58 = vpop.permute.xlu1 %251 }
 0x19d   :  { %v226_v60 = vadd.f32 1e-05, %v218_v56  ;;  %v217_v61 = vsub.f32 %v209_v57, %v213_v55 }
 0x19f   :  { %671 = vrsqrt.f32 %v226_v60  ;;  %v225_v62 = vadd.f32 1e-05, %v217_v61 }
 0x1a0   :  { %v277_v63 = vpop.permute.xlu1 %276 }
 0x1a1   :  { %673 = vrsqrt.f32 %v225_v62 }
 0x1a2   :  { %675 = vrsqrt.f32 %v223_v0  ;;  %v670_v3 = vpop.eup %669  ;;  %v257_v6 = vpop.permute.xlu0 %256 }
 0x1a3   :  { %v232_v12 = vmul.f32 %v670_v3, %v220_v7 }
 0x1a5   :  { %v247_v1 = vpop.permute.xlu1 %246 }
 0x1a6   :  { %v260_v19 = vmul.f32 %v247_v1, %v232_v12 }
 0x1aa   :  { %v273_v2 = vpop.permute.xlu1 %272 }
 0x1ac   :  { %v672_v5 = vpop.eup %671 }
 0x1ad   :  { %v234_v9 = vmul.f32 %v672_v5, %v222_v4 }
 0x1ae   :  { %v674_v10 = vpop.eup %673 }
 0x1af   :  { %v233_v11 = vmul.f32 %v674_v10, %v221_v8  ;;  %v262_v13 = vmul.f32 %v257_v6, %v234_v9  ;;  %v242_v14 = vpop.permute.xlu1 %241  ;;  %v676_v17 = vpop.eup %675 }
 0x1b0   :  { %v231_v27 = vmul.f32 %v676_v17, %v219_v18 }
 0x1b1   :  { %v261_v15 = vmul.f32 %v252_v58, %v233_v11  ;;  %v282_v16 = vadd.f32 %v277_v63, %v262_v13 }
 0x1b2   :  { %v259_v31 = vmul.f32 %v242_v14, %v231_v27 }
 0x1b3   :  { %v281_v20 = vadd.f32 %v273_v2, %v261_v15  ;;  %v286_v22 = vmul.f32 0.01, %v282_v16 }
 0x1b4   :  { %v269_v24 = vpop.permute.xlu1 %268 }
 0x1b5   :  { %v285_v25 = vmul.f32 0.01, %v281_v20  ;;  %v280_v21 = vadd.f32 %v269_v24, %v260_v19  ;;  %v290_v28 = vmax.f32 %v282_v16, %v286_v22 }
 0x1b7   :  { %v289_v26 = vmax.f32 %v281_v20, %v285_v25  ;;  %v284_v34 = vmul.f32 0.01, %v280_v21  ;;  %635 = vmatprep.subr.mxu1 %v290_v28 }
 0x1b8   :  { %v265_v35 = vpop.permute.xlu1 %264  ;;  %636 = vmatpush3.msra.mxu1 %v290_v28 }
 0x1b9   :  { %v288_v36 = vmax.f32 %v280_v21, %v284_v34  ;;  %v279_v37 = vadd.f32 %v265_v35, %v259_v31  ;;  %637 = vmatprep.subr.mxu1 %v289_v26 }
 0x1ba   :  { %638 = vmatpush3.msra.mxu1 %v289_v26 }
 0x1bb   :  { %v283_v38 = vmul.f32 0.01, %v279_v37  ;;  %639 = vmatprep.subr.mxu1 %v288_v36 }
 0x1bc   :  { %640 = vmatpush3.msra.mxu1 %v288_v36 }
 0x1bd   :  { %v287_v23 = vmax.f32 %v279_v37, %v283_v38 }
 0x1bf   :  { %641 = vmatprep.subr.mxu1 %v287_v23 }
 0x1c0   :  { %642 = vmatpush3.msra.mxu1 %v287_v23 }
 0x1c1   :  { %644 = vmatmul.mubr.msk.f32.vlgmr.msra.gmra.mxu1 %vm295_vm1, %v292_v39 }
 0x1c2   :  { %646 = vmatprep.mubr.msk.f32.mxu1 %vm295_vm1, %v293_v40 }
 0x1c5   :  { %647 = vmatmul.mubr.msk.f32.gmra.mxu1 %vm295_vm1, %v294_v41 }
 0x281   :  { %v878_v43 = vpop.f32.mrf.mxu1 }
 0x282   :  { %395 = vadd.xlane.f32.xlu0 %v878_v43  ;;  %v406_v45 = vmul.f32 %v878_v43, %v878_v43 }
 0x283   :  { %v881_v44 = vpop.f32.mrf.mxu1 }
 0x284   :  { %393 = vadd.xlane.f32.xlu1 %v881_v44  ;;  %v405_v47 = vmul.f32 %v881_v44, %v881_v44 }
 0x285   :  { %v886_v46 = vpop.f32.mrf.mxu1 }
 0x286   :  { %411 = vadd.xlane.f32.xlu0 %v406_v45  ;;  %v408_v50 = vmul.f32 %v886_v46, %v886_v46 }
 0x287   :  { %v891_v48 = vpop.f32.mrf.mxu1 }
 0x288   :  { %399 = vadd.xlane.f32.xlu1 %v886_v46  ;;  %v407_v49 = vmul.f32 %v891_v48, %v891_v48 }
 0x28a   :  { %409 = vadd.xlane.f32.xlu0 %v405_v47 }
 0x28c   :  { %397 = vadd.xlane.f32.xlu1 %v891_v48 }
 0x28e   :  { %413 = vadd.xlane.f32.xlu0 %v407_v49 }
 0x290   :  { %415 = vadd.xlane.f32.xlu1 %v408_v50 }
 0x2a1   :  { %450 = vperm.xlu1 %662, %v845_v32  }
 0x2a4   :  { %446 = vperm.xlu0 %661, %v853_v33  }
 0x2a5   :  { %663 = vset.pattern.permute.xlu1 %v688_v51 }
 0x2a6   :  { %466 = vperm.xlu1 %663, %v853_v33  }
 0x2a8   :  { %668 = vset.pattern.permute.xlu0 %v688_v51 }
 0x2aa   :  { %664 = vset.pattern.permute.xlu1 %v687_v42 }
 0x2ab   :  { %454 = vperm.xlu1 %664, %v833_v29  }
 0x2af   :  { %665 = vset.pattern.permute.xlu1 %v688_v51 }
 0x2b0   :  { %470 = vperm.xlu1 %665, %v845_v32  }
 0x2b4   :  { %666 = vset.pattern.permute.xlu1 %v687_v42 }
 0x2b5   :  { %458 = vperm.xlu1 %666, %v839_v30  }
 0x2b9   :  { %667 = vset.pattern.permute.xlu1 %v688_v51 }
 0x2ba   :  { %474 = vperm.xlu1 %667, %v833_v29  }
 0x2be   :  { %478 = vperm.xlu1 %667, %v839_v30  }
 0x30b   :  { %v396_v52 = vpop.xlane.xlu0 %395 }
 0x30c   :  { %v402_v53 = vmul.f32 0.0078125, %v396_v52 }
 0x30d   :  { %v394_v54 = vpop.xlane.xlu1 %393 }
 0x30e   :  { %v422_v33 = vmul.f32 %v402_v53, %v402_v53  ;;  %v401_v56 = vmul.f32 0.0078125, %v394_v54  ;;  %v430_v15 = vsub.f32 %v878_v43, %v402_v53 }
 0x30f   :  { %v412_v55 = vpop.xlane.xlu0 %411 }
 0x310   :  { %v418_v57 = vmul.f32 0.0078125, %v412_v55  ;;  %v421_v61 = vmul.f32 %v401_v56, %v401_v56  ;;  %v429_v16 = vsub.f32 %v881_v44, %v401_v56 }
 0x311   :  { %v400_v58 = vpop.xlane.xlu1 %399 }
 0x312   :  { %v426_v59 = vsub.f32 %v418_v57, %v422_v33  ;;  %v404_v0 = vmul.f32 0.0078125, %v400_v58 }
 0x313   :  { %v410_v60 = vpop.xlane.xlu0 %409 }
 0x314   :  { %v434_v32 = vadd.f32 1e-05, %v426_v59  ;;  %v417_v62 = vmul.f32 0.0078125, %v410_v60  ;;  %v424_v6 = vmul.f32 %v404_v0, %v404_v0  ;;  %v432_v39 = vsub.f32 %v886_v46, %v404_v0 }
 0x315   :  { %v398_v63 = vpop.xlane.xlu1 %397 }
 0x316   :  { %677 = vrsqrt.f32 %v434_v32  ;;  %v425_v1 = vsub.f32 %v417_v62, %v421_v61  ;;  %v403_v29 = vmul.f32 0.0078125, %v398_v63 }
 0x317   :  { %v414_v2 = vpop.xlane.xlu0 %413 }
 0x318   :  { %v433_v30 = vadd.f32 1e-05, %v425_v1  ;;  %v423_v3 = vmul.f32 %v403_v29, %v403_v29  ;;  %v419_v4 = vmul.f32 0.0078125, %v414_v2  ;;  %v431_v31 = vsub.f32 %v891_v48, %v403_v29 }
 0x319   :  { %v416_v5 = vpop.xlane.xlu1 %415 }
 0x31a   :  { %679 = vrsqrt.f32 %v433_v30  ;;  %v427_v7 = vsub.f32 %v419_v4, %v423_v3  ;;  %v420_v8 = vmul.f32 0.0078125, %v416_v5 }
 0x31c   :  { %v435_v9 = vadd.f32 1e-05, %v427_v7  ;;  %v428_v10 = vsub.f32 %v420_v8, %v424_v6 }
 0x31d   :  { %v451_v11 = vpop.permute.xlu1 %450 }
 0x31e   :  { %681 = vrsqrt.f32 %v435_v9  ;;  %v436_v12 = vadd.f32 1e-05, %v428_v10 }
 0x31f   :  { %v447_v20 = vpop.permute.xlu0 %446 }
 0x320   :  { %683 = vrsqrt.f32 %v436_v12 }
 0x321   :  { %v467_v13 = vpop.permute.xlu1 %466 }
 0x323   :  { %v678_v14 = vpop.eup %677 }
 0x324   :  { %v442_v17 = vmul.f32 %v678_v14, %v430_v15 }
 0x326   :  { %v455_v18 = vpop.permute.xlu1 %454  ;;  %v462_v24 = vmul.f32 %v451_v11, %v442_v17 }
 0x327   :  { %v680_v19 = vpop.eup %679 }
 0x328   :  { %v441_v22 = vmul.f32 %v680_v19, %v429_v16 }
 0x32a   :  { %v461_v25 = vmul.f32 %v447_v20, %v441_v22 }
 0x32b   :  { %v471_v27 = vpop.permute.xlu1 %470  ;;  %v682_v26 = vpop.eup %681 }
 0x32c   :  { %v481_v21 = vadd.f32 %v467_v13, %v461_v25  ;;  %v482_v28 = vadd.f32 %v471_v27, %v462_v24  ;;  %v443_v35 = vmul.f32 %v682_v26, %v431_v31 }
 0x32d   :  { %v684_v23 = vpop.eup %683 }
 0x32e   :  { %v485_v34 = vmul.f32 0.01, %v481_v21  ;;  %v486_v36 = vmul.f32 0.01, %v482_v28  ;;  %v463_v40 = vmul.f32 %v455_v18, %v443_v35  ;;  %v444_v42 = vmul.f32 %v684_v23, %v432_v39 }
 0x330   :  { %v459_v37 = vpop.permute.xlu1 %458  ;;  %v489_v38 = vmax.f32 %v481_v21, %v485_v34  ;;  %v490_v41 = vmax.f32 %v482_v28, %v486_v36 }
 0x331   :  { %v464_v45 = vmul.f32 %v459_v37, %v444_v42 }
 0x332   :  { %493 = vxpose.xlu1.b32.start [1/4] (short) %v489_v38, 128 }
 0x335   :  { %v475_v43 = vpop.permute.xlu1 %474 }
 0x336   :  { %v483_v44 = vadd.f32 %v475_v43, %v463_v40  ;;  %494 = vxpose.xlu1.b32.cont [2/4] (short) %v490_v41, 128 }
 0x338   :  { %v487_v47 = vmul.f32 0.01, %v483_v44 }
 0x339   :  { %v479_v49 = vpop.permute.xlu1 %478 }
 0x33a   :  { %v491_v50 = vmax.f32 %v483_v44, %v487_v47  ;;  %v484_v48 = vadd.f32 %v479_v49, %v464_v45 }
 0x33c   :  { %v488_v51 = vmul.f32 0.01, %v484_v48  ;;  %495 = vxpose.xlu1.b32.cont [3/4] (short) %v491_v50, 128 }
 0x33e   :  { %v492_v52 = vmax.f32 %v484_v48, %v488_v51 }
 0x340   :  { %496 = vxpose.xlu1.b32.end [4/4] (short) %v492_v52, 128 }
 0x3b0   :  { %v509_v53 = vpop.trf.xlu1 }
 0x3b1   :  { %525 = vst.msk [vmem:[%s978_s4] sm:$0xff] %vm295_vm1, %v509_v53 }
 0x3b4   :  { %v510_v46 = vpop.trf.xlu1 }
 0x3b5   :  { %526 = vst.msk [vmem:[%s978_s4 + $0x8] sm:$0xff] %vm295_vm1, %v510_v46 }
 0x3b8   :  { %v511_v54 = vpop.trf.xlu1 }
 0x3b9   :  { %527 = vst.msk [vmem:[%s978_s4 + $0x10] sm:$0xff] %vm295_vm1, %v511_v54 }
 0x3bc   :  { %v512_v55 = vpop.trf.xlu1 }
 0x3bd   :  { %528 = vst.msk [vmem:[%s978_s4 + $0x18] sm:$0xff] %vm295_vm1, %v512_v55 }
 0x3c0   :  { %v513_v33 = vpop.trf.xlu1 }
 0x3c1   :  { %529 = vst.msk [vmem:[%s978_s4 + $0x20] sm:$0xff] %vm295_vm1, %v513_v33 }
 0x3c4   :  { %v514_v56 = vpop.trf.xlu1 }
 0x3c5   :  { %530 = vst.msk [vmem:[%s978_s4 + $0x28] sm:$0xff] %vm295_vm1, %v514_v56 }
 0x3c8   :  { %v515_v57 = vpop.trf.xlu1 }
 0x3c9   :  { %531 = vst.msk [vmem:[%s978_s4 + $0x30] sm:$0xff] %vm295_vm1, %v515_v57 }
 0x3cc   :  { %v516_v58 = vpop.trf.xlu1 }
 0x3cd   :  { %532 = vst.msk [vmem:[%s978_s4 + $0x38] sm:$0xff] %vm295_vm1, %v516_v58 }
 0x3d0   :  { %v517_v59 = vpop.trf.xlu1 }
 0x3d1   :  { %533 = vst.msk [vmem:[%s978_s4 + $0x40] sm:$0xff] %vm295_vm1, %v517_v59 }
 0x3d4   :  { %v518_v60 = vpop.trf.xlu1 }
 0x3d5   :  { %534 = vst.msk [vmem:[%s978_s4 + $0x48] sm:$0xff] %vm295_vm1, %v518_v60 }
 0x3d8   :  { %v519_v61 = vpop.trf.xlu1 }
 0x3d9   :  { %535 = vst.msk [vmem:[%s978_s4 + $0x50] sm:$0xff] %vm295_vm1, %v519_v61 }
 0x3dc   :  { %v520_v32 = vpop.trf.xlu1 }
 0x3dd   :  { %536 = vst.msk [vmem:[%s978_s4 + $0x58] sm:$0xff] %vm295_vm1, %v520_v32 }
 0x3e0   :  { %v521_v62 = vpop.trf.xlu1 }
 0x3e1   :  { %537 = vst.msk [vmem:[%s978_s4 + $0x60] sm:$0xff] %vm295_vm1, %v521_v62 }
 0x3e4   :  { %v522_v63 = vpop.trf.xlu1 }
 0x3e5   :  { %538 = vst.msk [vmem:[%s978_s4 + $0x68] sm:$0xff] %vm295_vm1, %v522_v63 }
 0x3e8   :  { %v523_v0 = vpop.trf.xlu1 }
 0x3e9   :  { %539 = vst.msk [vmem:[%s978_s4 + $0x70] sm:$0xff] %vm295_vm1, %v523_v0 }
 0x3ec   :  { %v524_v1 = vpop.trf.xlu1 }
 0x3ed   :  { %540 = vst.msk [vmem:[%s978_s4 + $0x78] sm:$0xff] %vm295_vm1, %v524_v1 }

</bundles_post_ra>
